<compile_context>
chip_gen: v7x
topology: tpu7x:2x2x1
jax: 0.10.0
libtpu: 0.0.40
codegen_flags: <defaults>
</compile_context>

<pallas_src>
import functools

import jax
import jax.numpy as jnp
from jax.experimental import pallas as pl
from jax.experimental.pallas import tpu as pltpu

_LANE = 128
_SUBLANE = 8
_MIN_GRID_STEPS = 8  # keep the pipeline / both v7x TensorCores fed


def _round_up(x, m):
    return (x + m - 1) // m * m


def _l2_partial_kernel(o_ref, t_ref, out_ref, *, C, TR, R, out_rows, n_strips,
                       need_row_mask):
    """o_ref/t_ref: (1, C, TR, 128).  out_ref: (1, 1, out_rows, 128).

    Writes per-tile partial sums of per-pixel channel L2 norms, folded to one
    lane-dense (out_rows, 128) block with elementwise adds only.  Rows >= R
    (block overhang on the last spatial tile) are masked to zero before the
    sqrt so they contribute nothing.
    """
    s = pl.program_id(1)

    def strip_norm(strip):
        # One `out_rows`-row strip of this tile; temps stay vreg-sized.
        if isinstance(strip, int):
            base = strip * out_rows
        else:
            base = pl.multiple_of(strip * out_rows, out_rows)
        acc = None
        for c in range(C):  # C is tiny (2-4): unrolled, pure VPU adds
            oc = o_ref[0, c, pl.ds(base, out_rows), :].astype(jnp.float32)
            tc = t_ref[0, c, pl.ds(base, out_rows), :].astype(jnp.float32)
            d = oc - tc
            acc = d * d if acc is None else acc + d * d
        if need_row_mask:
            row0 = s * TR + strip * out_rows
            rows = jax.lax.broadcasted_iota(jnp.int32, (out_rows, _LANE), 0) + row0
            acc = jnp.where(rows < R, acc, 0.0)
        return jnp.sqrt(acc)  # per-pixel L2 norm (EUP)

    if n_strips == 1:
        folded = strip_norm(0)
    else:
        folded = jax.lax.fori_loop(
            0, n_strips,
            lambda i, carry: carry + strip_norm(i),
            jnp.zeros((out_rows, _LANE), jnp.float32))
    out_ref[...] = folded.reshape(1, 1, out_rows, _LANE)


def _vmem_capacity_bytes():
    # Generation detection (v7x has 64 MiB/TC, v5e/v6e have 128 MiB).
    # Falls back to 128 MiB if the query is unavailable.
    try:
        info = pltpu.get_tpu_info()
        return int(getattr(info, "vmem_capacity_bytes", 128 * 1024 * 1024))
    except Exception:
        return 128 * 1024 * 1024


def l2_loss_pallas(output_flow, target_flow):
    """output_flow, target_flow: (B, C, H, W) arrays. Returns scalar f32 loss."""
    assert output_flow.shape == target_flow.shape
    B, C, H, W = output_flow.shape
    HW = H * W
    itemsize = jnp.dtype(output_flow.dtype).itemsize  # dtype-aware tiling (bf16 ok)

    # ---- generation-specific budgets ----
    vmem_phys = _vmem_capacity_bytes()
    if vmem_phys <= 64 * 1024 * 1024:      # v7x-class: 64 MiB / TC
        tile_bytes = 4 * 1024 * 1024        # per input per grid step
        vmem_limit = 48 * 1024 * 1024
    else:                                   # v5e / v6e: 128 MiB
        tile_bytes = 8 * 1024 * 1024
        vmem_limit = 64 * 1024 * 1024

    # ---- lane-dense (B, C, R, 128) layout: free reshape when HW % 128 == 0 ----
    HW_pad = _round_up(HW, _LANE)
    o = output_flow.reshape(B, C, HW)
    t = target_flow.reshape(B, C, HW)
    if HW_pad != HW:
        # Only for odd resolutions: minimal zero pad (< 128 elems per row) so
        # the lane-dense reshape exists; zero pads contribute sqrt(0)=0 and
        # the denominator uses the true B*H*W.
        pad = ((0, 0), (0, 0), (0, HW_pad - HW))
        o = jnp.pad(o, pad)
        t = jnp.pad(t, pad)
    R = HW_pad // _LANE
    o = o.reshape(B, C, R, _LANE)
    t = t.reshape(B, C, R, _LANE)

    # ---- tile-height selection (multiple of 8, VMEM-budgeted, >= ~8 steps) ----
    if R <= _SUBLANE:
        TR = R  # full-extent block: no overhang, no mask
    else:
        max_tr = max(_SUBLANE,
                     (tile_bytes // (C * _LANE * itemsize)) // _SUBLANE * _SUBLANE)
        TR = min(max_tr, (R // _SUBLANE) * _SUBLANE)
        while TR > _SUBLANE and B * pl.cdiv(R, TR) < _MIN_GRID_STEPS:
            TR = max(_SUBLANE, (TR // 2) // _SUBLANE * _SUBLANE)
    n_tiles = pl.cdiv(R, TR)
    need_row_mask = (R % TR) != 0
    out_rows = min(TR, _SUBLANE)
    n_strips = max(1, TR // _SUBLANE)

    kernel = functools.partial(
        _l2_partial_kernel, C=C, TR=TR, R=R, out_rows=out_rows,
        n_strips=n_strips, need_row_mask=need_row_mask)

    in_specs = [
        pl.BlockSpec((1, C, TR, _LANE), lambda b, s: (b, 0, s, 0)),
        pl.BlockSpec((1, C, TR, _LANE), lambda b, s: (b, 0, s, 0)),
    ]
    out_spec = pl.BlockSpec((1, 1, out_rows, _LANE), lambda b, s: (b, s, 0, 0))

    cost = pl.CostEstimate(
        flops=3 * B * C * HW,                        # sub + mul + add per element
        transcendentals=B * HW,                      # one sqrt per pixel
        bytes_accessed=2 * B * C * HW * itemsize     # both inputs read once
        + B * n_tiles * out_rows * _LANE * 4,        # tiny partial writeback
    )

    partials = pl.pallas_call(
        kernel,
        out_shape=jax.ShapeDtypeStruct((B, n_tiles, out_rows, _LANE), jnp.float32),
        grid_spec=pl.GridSpec(
            grid=(B, n_tiles),
            in_specs=in_specs,
            out_specs=out_spec,
        ),
        compiler_params=pltpu.CompilerParams(
            dimension_semantics=("parallel", "parallel"),
            vmem_limit_bytes=vmem_limit,
        ),
        cost_estimate=cost,
    )(o, t)

    # Tiny final reduction + mean in plain JAX (denominator = true B*H*W).
    return jnp.sum(partials) / jnp.float32(B * HW)


def l2_loss_module(output_dict, target_dict):
    """Mirrors L2Loss.forward: dict unpacking is glue, the math is in Pallas."""
    output = output_dict["flow_preds"]   # (B, C, H, W)
    target = target_dict["flows"][:, 0]  # (B, 1, C, H, W) -> (B, C, H, W)
    return l2_loss_pallas(output, target)


if __name__ == "__main__":
    key = jax.random.PRNGKey(0)
    k1, k2 = jax.random.split(key)

    B, C, H, W = 2, 4, 16, 16
    flow_preds = jax.random.normal(k1, (B, C, H, W), dtype=jnp.float32)
    flows = jax.random.normal(k2, (B, 1, C, H, W), dtype=jnp.float32)

    output_dict = {"flow_preds": flow_preds}
    target_dict = {"flows": flows}

    loss = l2_loss_module(output_dict, target_dict)
    loss = jax.block_until_ready(loss)

    # Pure-JAX reference for sanity (not part of the kernel).
    ref = jnp.mean(jnp.linalg.norm(flow_preds - flows[:, 0], ord=2, axis=1))
    assert jnp.allclose(loss, ref, rtol=1e-5, atol=1e-5), (loss, ref)

    print("KERNEL_OK")
</pallas_src>

<mosaic_0001>
module attributes {stable_mosaic.version = 11 : i64} {
  func.func @_l2_partial_kernel(%arg0: i32, %arg1: i32, %arg2: memref<1x4x2x128xf32, #tpu.memory_space<vmem>>, %arg3: memref<1x4x2x128xf32, #tpu.memory_space<vmem>>, %arg4: memref<1x1x2x128xf32, #tpu.memory_space<vmem>>) attributes {dimension_semantics = [#tpu.dimension_semantics<parallel>, #tpu.dimension_semantics<parallel>], iteration_bounds = array<i64: 2, 1>, scalar_prefetch = 0 : i64, scratch_operands = 0 : i64, tpu.core_type = #tpu.core_type<tc>, window_params = [{transform_indices = @transform_0, window_bounds = array<i64: 1, 4, 2, 128>}, {transform_indices = @transform_1, window_bounds = array<i64: 1, 4, 2, 128>}, {transform_indices = @transform_2, window_bounds = array<i64: 1, 1, 2, 128>}]} {
    %c0 = arith.constant 0 : index
    %c0_0 = arith.constant 0 : index
    %c0_1 = arith.constant 0 : index
    %c0_2 = arith.constant 0 : index
    %0 = vector.load %arg2[%c0, %c0_0, %c0_1, %c0_2] : memref<1x4x2x128xf32, #tpu.memory_space<vmem>>, vector<1x1x2x128xf32>
    %1 = vector.shape_cast %0 : vector<1x1x2x128xf32> to vector<2x128xf32>
    %c0_3 = arith.constant 0 : index
    %c0_4 = arith.constant 0 : index
    %c0_5 = arith.constant 0 : index
    %c0_6 = arith.constant 0 : index
    %2 = vector.load %arg3[%c0_3, %c0_4, %c0_5, %c0_6] : memref<1x4x2x128xf32, #tpu.memory_space<vmem>>, vector<1x1x2x128xf32>
    %3 = vector.shape_cast %2 : vector<1x1x2x128xf32> to vector<2x128xf32>
    %4 = arith.subf %1, %3 : vector<2x128xf32>
    %5 = arith.mulf %4, %4 : vector<2x128xf32>
    %c0_7 = arith.constant 0 : index
    %c1 = arith.constant 1 : index
    %c0_8 = arith.constant 0 : index
    %c0_9 = arith.constant 0 : index
    %6 = vector.load %arg2[%c0_7, %c1, %c0_8, %c0_9] : memref<1x4x2x128xf32, #tpu.memory_space<vmem>>, vector<1x1x2x128xf32>
    %7 = vector.shape_cast %6 : vector<1x1x2x128xf32> to vector<2x128xf32>
    %c0_10 = arith.constant 0 : index
    %c1_11 = arith.constant 1 : index
    %c0_12 = arith.constant 0 : index
    %c0_13 = arith.constant 0 : index
    %8 = vector.load %arg3[%c0_10, %c1_11, %c0_12, %c0_13] : memref<1x4x2x128xf32, #tpu.memory_space<vmem>>, vector<1x1x2x128xf32>
    %9 = vector.shape_cast %8 : vector<1x1x2x128xf32> to vector<2x128xf32>
    %10 = arith.subf %7, %9 : vector<2x128xf32>
    %11 = arith.mulf %10, %10 : vector<2x128xf32>
    %12 = arith.addf %5, %11 : vector<2x128xf32>
    %c0_14 = arith.constant 0 : index
    %c2 = arith.constant 2 : index
    %c0_15 = arith.constant 0 : index
    %c0_16 = arith.constant 0 : index
    %13 = vector.load %arg2[%c0_14, %c2, %c0_15, %c0_16] : memref<1x4x2x128xf32, #tpu.memory_space<vmem>>, vector<1x1x2x128xf32>
    %14 = vector.shape_cast %13 : vector<1x1x2x128xf32> to vector<2x128xf32>
    %c0_17 = arith.constant 0 : index
    %c2_18 = arith.constant 2 : index
    %c0_19 = arith.constant 0 : index
    %c0_20 = arith.constant 0 : index
    %15 = vector.load %arg3[%c0_17, %c2_18, %c0_19, %c0_20] : memref<1x4x2x128xf32, #tpu.memory_space<vmem>>, vector<1x1x2x128xf32>
    %16 = vector.shape_cast %15 : vector<1x1x2x128xf32> to vector<2x128xf32>
    %17 = arith.subf %14, %16 : vector<2x128xf32>
    %18 = arith.mulf %17, %17 : vector<2x128xf32>
    %19 = arith.addf %12, %18 : vector<2x128xf32>
    %c0_21 = arith.constant 0 : index
    %c3 = arith.constant 3 : index
    %c0_22 = arith.constant 0 : index
    %c0_23 = arith.constant 0 : index
    %20 = vector.load %arg2[%c0_21, %c3, %c0_22, %c0_23] : memref<1x4x2x128xf32, #tpu.memory_space<vmem>>, vector<1x1x2x128xf32>
    %21 = vector.shape_cast %20 : vector<1x1x2x128xf32> to vector<2x128xf32>
    %c0_24 = arith.constant 0 : index
    %c3_25 = arith.constant 3 : index
    %c0_26 = arith.constant 0 : index
    %c0_27 = arith.constant 0 : index
    %22 = vector.load %arg3[%c0_24, %c3_25, %c0_26, %c0_27] : memref<1x4x2x128xf32, #tpu.memory_space<vmem>>, vector<1x1x2x128xf32>
    %23 = vector.shape_cast %22 : vector<1x1x2x128xf32> to vector<2x128xf32>
    %24 = arith.subf %21, %23 : vector<2x128xf32>
    %25 = arith.mulf %24, %24 : vector<2x128xf32>
    %26 = arith.addf %19, %25 : vector<2x128xf32>
    %27 = math.sqrt %26 : vector<2x128xf32>
    %28 = vector.shape_cast %27 : vector<2x128xf32> to vector<1x1x2x128xf32>
    %c0_28 = arith.constant 0 : index
    %c0_29 = arith.constant 0 : index
    %c0_30 = arith.constant 0 : index
    %c0_31 = arith.constant 0 : index
    %29 = vector.load %arg4[%c0_28, %c0_29, %c0_30, %c0_31] : memref<1x1x2x128xf32, #tpu.memory_space<vmem>>, vector<1x1x2x128xf32>
    tpu.vector_store %arg4[%c0_28, %c0_29, %c0_30, %c0_31], %28 {strides = array<i32>} : memref<1x1x2x128xf32, #tpu.memory_space<vmem>>, vector<1x1x2x128xf32>,
    return
  }
  func.func @transform_0(%arg0: i32, %arg1: i32) -> (i32, i32, i32, i32) {
    %c0_i32 = arith.constant 0 : i32
    %c0_i32_0 = arith.constant 0 : i32
    %c0_i32_1 = arith.constant 0 : i32
    return %arg0, %c0_i32, %arg1, %c0_i32_0 : i32, i32, i32, i32
  }
  func.func @transform_1(%arg0: i32, %arg1: i32) -> (i32, i32, i32, i32) {
    %c0_i32 = arith.constant 0 : i32
    %c0_i32_0 = arith.constant 0 : i32
    %c0_i32_1 = arith.constant 0 : i32
    return %arg0, %c0_i32, %arg1, %c0_i32_0 : i32, i32, i32, i32
  }
  func.func @transform_2(%arg0: i32, %arg1: i32) -> (i32, i32, i32, i32) {
    %c0_i32 = arith.constant 0 : i32
    %c0_i32_0 = arith.constant 0 : i32
    %c0_i32_1 = arith.constant 0 : i32
    return %arg0, %arg1, %c0_i32, %c0_i32_0 : i32, i32, i32, i32
  }
}

</mosaic_0001>

<bundles_post_ra>
// kernel: tpu_custom_call.1
= control target key start
LH: loop header
LB: loop body
LE: loop exit
PB: predicated region body
PF: predicated region fallthrough
CT: control target
= control target key end

     0   :  { %7 = vsyncpa [#allocation3], 0  ;;  %s876_s0 = inlined_call_operand.hbm [shape: f32[2,4,2,128], index: 0, kind: input, shape index: {}]   ;;  %s877_s1 = inlined_call_operand.hbm [shape: f32[2,4,2,128], index: 1, kind: input, shape index: {}]   ;;  %s878_s2 = inlined_call_operand.hbm [shape: f32[2,1,2,128], index: 2, kind: output, shape index: {}]  }
   0x1   :  { %9 = vsyncpa [#allocation3 + $0x1], 0 }
   0x2   :  { %10 = vsyncpa [#allocation6], 0 }
   0x3   :  { %12 = vsyncpa [#allocation6 + $0x1], 0 }
   0x4   :  { %13 = vsyncpa [#allocation4], 0 }
   0x5   :  { %15 = vsyncpa [#allocation4 + $0x1], 0  ;;  %s641_s9 = smov 0   ;;  %s643_s10 = smov 0  }
   0x6   :  { %s645_s11 = smov 0   ;;  %s647_s12 = smov 0  }
   0x7   :  { %s649_s13 = smov 0   ;;  %s651_s14 = smov 0  }
   0x8 LB: > { %s376_s15 = sadd.s32 4294967295, %s619_s14   ;;  %s377_s16 = sadd.s32 4294967294, %s619_s14   ;;  %s619_s14 = sphi %s651_s14, %s21_s14   ;;  %s615_s13 = sphi %s649_s13, %s896_s13   ;;  %s611_s12 = sphi %s647_s12, %s895_s12   ;;  %s607_s11 = sphi %s645_s11, %s894_s11   ;;  %s603_s10 = sphi %s643_s10, %s893_s10   ;;  %s599_s9 = sphi %s641_s9, %s892_s9  }
   0x9   : > { %s33_s17 = sadd.s32 1, %s615_s13  ;;  %s42_s18 = sadd.s32 1, %s607_s11 }
   0xa   : > { %p35_p0 = scmp.ge.s32.totalorder %s33_s17, 2  ;;  %p49_p1 = scmp.ne.s32.totalorder %s607_s11, %s603_s10 }
   0xb   : > { %p50_p2 = scmp.eq.s32.totalorder %s619_s14, 0  ;;  %p55_p3 = scmp.ne.s32.totalorder %s603_s10, %s599_s9 }
   0xc   : > { %s898_s17 = smov (%p35_p0, %s33_s17), 0  ;;  %p56_p5 = scmp.eq.s32.totalorder %s376_s15, 0 }
   0xd   : > { %p682_p4 = por %p50_p2, %p49_p1  ;;  %s37_s20 = ssub.s32 %s615_s13, %s898_s17 }
   0xe   : > { %p109_p6 = scmp.eq.s32.totalorder %s376_s15, 1  ;;  %p40_p7 = scmp.eq.s32.totalorder %s37_s20, 0 }
   0xf   : > { %p688_p8 = por %p56_p5, %p55_p3  ;;  %p115_p10 = scmp.eq.s32.totalorder %s377_s16, 1 }
  0x10   : > { %p692_p9 = por %p109_p6, %p49_p1  ;;  %p419_p13 = scmp.lt.s32.totalorder %s619_s14, 2 }
  0x11   : > { %s882_s21 = scalar_select %p688_p8, 1, 0 }
  0x12   : > { %s883_s22 = scalar_select %p692_p9, 1, 0 }
  0x13   : > { %s697_s23 = scalar_select %p40_p7, %s607_s11, %s42_s18  }
  0x14   : > { %p699_p11 = por %p115_p10, %p55_p3  ;;  %s706_s25 = sand.u32 1, %s607_s11  }
  0x15   : > { %s380_s26 = sshll.u32 %s706_s25, 3  ;;  %s400_s27 = sshll.u32 %s615_s13, 7 }
  0x16   : > { %s884_s24 = scalar_select %p699_p11, 1, 0 }
  0x17   : > { %s715_s30 = scalar_lea.hbm %s876_s0, %s400_s27  ;;  %s139_s3 = scalar_lea.vmem [#allocation2], %s380_s26 }
  0x18   : > { %s147_s4 = sshll.u32 %s139_s3, 4  ;;  %p723_p0 = pnand %p419_p13, %p682_p4  ;;  %s719_s4 = int_to_ptr.vmem [resolvable:$true] %s147_s4 }
  0x19   : > { %s136_s6 = scalar_lea.sflag [#allocation3], %s706_s25  ;;  %s473_s7 = scalar_lea.hbm %s715_s30, 128 }
  0x1a   : > { %p474_p2 = scmp.ne.s32.totalorder %s715_s30, %s473_s7  ;;  %p475_p3 = pneg %p723_p0 }
  0x1b   : > { %s478_s16 = scalar_lea.hbm %s876_s0, 256  ;;  %p479_p4 = scmp.lt.u32.totalorder %s715_s30, %s876_s0 }
  0x1c   : > { %p476_p5 = pnand %p475_p3, %p474_p2  ;;  %p480_p7 = scmp.lt.u32.totalorder %s478_s16, %s473_s7 }
  0x1d   : > { %p482_p13 = scmp.lt.u32.totalorder %s473_s7, %s715_s30 }
  0x1e   : > { %p477_p6 = pneg %p476_p5  ;;  %p481_p10 = por %p480_p7, %p479_p4 }
  0x20   : > { %p483_p12 = por %p482_p13, %p481_p10 }
  0x22   : > { %p484_p1 = pnand %p483_p12, %p477_p6 }
  0x24   : > { %487 = shalt.err (!%p484_p1)
}
  0x25   : > { %s488_s20 = scalar_lea.vmem %s719_s4, 128  ;;  %s621_s28 = smov [#allocation2]  }
  0x26   : > { %p489_p2 = scmp.ne.s32.totalorder %s719_s4, %s488_s20  ;;  %s493_s29 = sshll.u32 %s621_s28, 4  ;;  %s494_s29 = int_to_ptr.vmem [resolvable:$false] %s493_s29 }
  0x27   : > { %s495_s3 = scalar_lea.vmem %s494_s29, 256  ;;  %p496_p9 = scmp.lt.s32.totalorder %s719_s4, %s494_s29 }
  0x28   : > { %p491_p5 = pnand %p489_p2, %p475_p3  ;;  %p497_p4 = scmp.lt.s32.totalorder %s495_s3, %s488_s20 }
  0x2a   : > { %p492_p11 = pneg %p491_p5  ;;  %p498_p7 = por %p497_p4, %p496_p9 }
  0x2c   : > { %p499_p10 = pnand %p498_p7, %p492_p11 }
  0x2e   : > { %502 = shalt.err (!%p499_p10)
}
  0x2f   : > { %s622_s7 = smov 32   ;;  %s623_s8 = smov 2  }
  0x30   : > { %411 = dma.hbm_to_vmem [thread:$0]  (!%p723_p0), %s715_s30, 128, %s719_s4, %s136_s6, %s622_s7, %s622_s7, %s623_s8  }
  0x31   : > { %p177_p9 = scmp.lt.s32.totalorder %s619_s14, 3  ;;  %s765_s18 = scalar_lea.hbm %s877_s1, %s400_s27 }
  0x32   : > { %p886_p11 = scmp.ge.s32.totalorder %s619_s14, 1  ;;  %s161_s20 = scalar_lea.vmem [#allocation5], %s380_s26 }
  0x33   : > { %s169_s28 = sshll.u32 %s161_s20, 4  ;;  %s158_s30 = scalar_lea.sflag [#allocation6], %s706_s25  ;;  %s775_s28 = int_to_ptr.vmem [resolvable:$true] %s169_s28 }
  0x34   : > { %p769_p12 = pnand %p886_p11, %p177_p9  ;;  %s503_s4 = scalar_lea.hbm %s765_s18, 128 }
  0x35   : > { %p504_p1 = scmp.ne.s32.totalorder %s765_s18, %s503_s4  ;;  %s508_s29 = scalar_lea.hbm %s877_s1, 256 }
  0x36   : > { %p509_p2 = scmp.lt.u32.totalorder %s765_s18, %s877_s1  ;;  %p510_p5 = scmp.lt.u32.totalorder %s508_s29, %s503_s4 }
  0x37   : > { %p506_p6 = pnand %p504_p1, %p475_p3  ;;  %p512_p7 = scmp.lt.u32.totalorder %s503_s4, %s765_s18 }
  0x38   : > { %p511_p4 = por %p510_p5, %p509_p2 }
  0x39   : > { %p507_p13 = pneg %p506_p6 }
  0x3a   : > { %p513_p10 = por %p512_p7, %p511_p4 }
  0x3c   : > { %p514_p9 = pnand %p513_p10, %p507_p13 }
  0x3e   : > { %517 = shalt.err (!%p514_p9)
}
  0x3f   : > { %s518_s26 = scalar_lea.vmem %s775_s28, 128  ;;  %s624_s16 = smov [#allocation5]  }
  0x40   : > { %p519_p11 = scmp.ne.s32.totalorder %s775_s28, %s518_s26  ;;  %s523_s20 = sshll.u32 %s624_s16, 4  ;;  %s524_s20 = int_to_ptr.vmem [resolvable:$false] %s523_s20 }
  0x41   : > { %s525_s27 = scalar_lea.vmem %s524_s20, 256  ;;  %p526_p8 = scmp.lt.s32.totalorder %s775_s28, %s524_s20 }
  0x42   : > { %p521_p1 = pnand %p519_p11, %p475_p3  ;;  %p527_p2 = scmp.lt.s32.totalorder %s525_s27, %s518_s26 }
  0x44   : > { %p522_p6 = pneg %p521_p1  ;;  %p528_p5 = por %p527_p2, %p526_p8 }
  0x46   : > { %p529_p4 = pnand %p528_p5, %p522_p6 }
  0x48   : > { %532 = shalt.err (!%p529_p4)
}
  0x49   : > { %414 = dma.hbm_to_vmem [thread:$0]  (!%p723_p0), %s765_s18, 128, %s775_s28, %s158_s30, %s622_s7, %s622_s7, %s623_s8  }
  0x4a   : > { %181 = sbr.rel (%p769_p12) target bundleno = 125 (0x7d), region = 28  ;;  %s809_s4 = sand.u32 (!%p769_p12), 1, %s603_s10  }
  0x4b   : > { %s387_s6 = sshll.u32 (!%p769_p12), %s809_s4, 3  ;;  %s184_s29 = scalar_lea.sflag (!%p769_p12), [#allocation3], %s809_s4 }
  0x4c   : > { %s187_s5 = scalar_lea.vmem (!%p769_p12), [#allocation2], %s387_s6  ;;  %p888_p8 = scmp.ne.s32.totalorder (!%p769_p12), %s882_s21, 0 }
  0x51   : > { %586 = dma.done.wait (%p888_p8), %s184_s29, 128  }
  0x52   : > { %588 = vsyncadd (%p888_p8), %s184_s29, 4294967168  ;;  %s193_s25 = scalar_lea.sflag [#allocation6], %s809_s4  ;;  %s196_s7 = scalar_lea.vmem [#allocation5], %s387_s6 }
  0x53   : > { %590 = dma.done.wait (%p888_p8), %s193_s25, 128  }
  0x54   : > { %592 = vsyncadd (%p888_p8), %s193_s25, 4294967168  ;;  %v222_v0 = vld [vmem:[%s187_s5] sm:$0x3]  ;;  %v223_v1 = vld [vmem:[%s196_s7] sm:$0x3]  ;;  %s389_s21 = sshll.u32 %s809_s4, 1 }
  0x55   : > { %v390_v2 = vld [vmem:[%s187_s5 + $0x2] sm:$0x3]  ;;  %v224_v3 = vsub.f32 %v222_v0, %v223_v1  ;;  %v391_v4 = vld [vmem:[%s196_s7 + $0x2] sm:$0x3]  ;;  %v392_v5 = vld [vmem:[%s187_s5 + $0x4] sm:$0x3] }
  0x56   : > { %v393_v6 = vld [vmem:[%s196_s7 + $0x4] sm:$0x3]  ;;  %v230_v7 = vsub.f32 %v390_v2, %v391_v4  ;;  %v394_v9 = vld [vmem:[%s187_s5 + $0x6] sm:$0x3]  ;;  %v395_v10 = vld [vmem:[%s196_s7 + $0x6] sm:$0x3] }
  0x57   : > { %v237_v8 = vsub.f32 %v392_v5, %v393_v6  ;;  %v225_v11 = vmul.f32 %v224_v3, %v224_v3  ;;  %v244_v12 = vsub.f32 %v394_v9, %v395_v10  ;;  %s221_s8 = scalar_lea.vmem [#allocation7], %s389_s21  ;;  %s397_s19 = sshll.u32 %s611_s12, 5 }
  0x58   : > { %v231_v13 = vmul.f32 %v230_v7, %v230_v7  ;;  %s270_s18 = sshll.u32 %s221_s8, 4  ;;  %s829_s3 = scalar_lea.hbm %s878_s2, %s397_s19  ;;  %s824_s18 = int_to_ptr.vmem [resolvable:$true] %s270_s18 }
  0x59   : > { %v238_v14 = vmul.f32 %v237_v8, %v237_v8  ;;  %v245_v16 = vmul.f32 %v244_v12, %v244_v12  ;;  %s256_s15 = scalar_lea.sflag [#allocation4], %s809_s4  ;;  %s533_s26 = scalar_lea.vmem %s824_s18, 32 }
  0x5a   : > { %v232_v15 = vadd.f32 %v231_v13, %v225_v11  ;;  %p534_p0 = scmp.ne.s32.totalorder %s824_s18, %s533_s26  ;;  %p889_p3 = scmp.ne.s32.totalorder %s883_s22, 0 }
  0x5b   : > { %s625_s12 = smov [#allocation7]  }
  0x5c   : > { %v239_v17 = vadd.f32 %v238_v14, %v232_v15  ;;  %p535_p12 = pnand %p534_p0, %p889_p3  ;;  %s537_s16 = sshll.u32 %s625_s12, 4  ;;  %s538_s16 = int_to_ptr.vmem [resolvable:$false] %s537_s16 }
  0x5d   : > { %s539_s20 = scalar_lea.vmem %s538_s16, 64  ;;  %p540_p7 = scmp.lt.s32.totalorder %s824_s18, %s538_s16 }
  0x5e   : > { %v246_v18 = vadd.f32 %v245_v16, %v239_v17  ;;  %p536_p13 = pneg %p535_p12  ;;  %p541_p10 = scmp.lt.s32.totalorder %s539_s20, %s533_s26 }
  0x60   : > { %471 = vrsqrt.f32 %v246_v18  ;;  %vm249_vm0 = vcmp.eq.f32.partialorder %v246_v18, inf  ;;  %v252_v20 = vand.u32 2147483648, %v246_v18  ;;  %vm251_vm1 = vcmp.eq.f32.partialorder %v246_v18, 0.0  ;;  %p542_p9 = por %p541_p10, %p540_p7 }
  0x62   : > { %p543_p11 = pnand %p542_p9, %p536_p13 }
  0x6a   : > { %v472_v19 = vpop.eup %471 }
  0x6b   : > { %v248_v21 = vmul.f32 %v472_v19, %v246_v18 }
  0x6d   : > { %v250_v22 = vsel %vm249_vm0, %v246_v18, %v248_v21 }
  0x6e   : > { %v253_v23 = vsel %vm251_vm1, %v252_v20, %v250_v22 }
  0x6f   : > { %254 = vst [vmem:[%s221_s8] sm:$0x3] %v253_v23 }
  0x70   : > { %546 = shalt.err (!%p543_p11)
}
  0x71   : > { %s547_s27 = scalar_lea.hbm %s829_s3, 32  ;;  %s551_s29 = scalar_lea.hbm %s878_s2, 64 }
  0x72   : > { %p548_p1 = scmp.ne.s32.totalorder %s829_s3, %s547_s27  ;;  %p552_p5 = scmp.lt.u32.totalorder %s829_s3, %s878_s2 }
  0x73   : > { %p553_p4 = scmp.lt.u32.totalorder %s551_s29, %s547_s27  ;;  %p555_p0 = scmp.lt.u32.totalorder %s547_s27, %s829_s3 }
  0x74   : > { %p549_p6 = pnand %p548_p1, %p889_p3 }
  0x75   : > { %p554_p8 = por %p553_p4, %p552_p5 }
  0x76   : > { %p550_p2 = pneg %p549_p6 }
  0x77   : > { %p556_p12 = por %p555_p0, %p554_p8 }
  0x79   : > { %p557_p13 = pnand %p556_p12, %p550_p2 }
  0x7b   : > { %560 = shalt.err (!%p557_p13)
}
  0x7c   : > { %406 = dma.vmem_to_hbm [thread:$0]  (%p889_p3), %s824_s18, 32, %s829_s3, %s256_s15  }
  0x7d PF: > { %s282_s7 = sand.u32 1, %s599_s9   ;;  %p890_p7 = scmp.ne.s32.totalorder %s884_s24, 0 }
  0x7e   : > { %p891_p10 = scmp.ge.s32.totalorder %s619_s14, 2  ;;  %s283_s21 = scalar_lea.sflag [#allocation4], %s282_s7 }
  0x80   : > { %p416_p9 = pnand %p891_p10, %p890_p7 }
  0x82   : > { %594 = dma.done.wait (!%p416_p9), %s283_s21, 32  }
  0x83   : > { %596 = vsyncadd (!%p416_p9), %s283_s21, 4294967264  ;;  %s21_s14 = sadd.s32 1, %s619_s14   ;;  %s892_s9 = smov %s603_s10 }
  0x84   : > { %p18_p11 = scmp.ge.s32.totalorder %s21_s14, 4   ;;  %s893_s10 = smov %s607_s11 }
  0x85   : > { %s894_s11 = smov %s697_s23  ;;  %s895_s12 = smov %s615_s13 }
  0x86   : > { %s896_s13 = smov %s898_s17  ;;  %20 = sbr.rel (!%p18_p11) target bundleno = 8 (0x8), region = 92 }
  0x8d   :  { %288 = vsyncpa [#allocation3], 1 }
  0x8e   :  { %290 = vsyncpa [#allocation3 + $0x1], 1 }
  0x8f   :  { %291 = vsyncpa [#allocation6], 1 }
  0x90   :  { %293 = vsyncpa [#allocation6 + $0x1], 1 }
  0x91   :  { %294 = vsyncpa [#allocation4], 1 }
  0x92   :  { %296 = vsyncpa [#allocation4 + $0x1], 1 }

</bundles_post_ra>
